<compile_context>
chip_gen: v6e
topology: v6e:2x2x1
jax: 0.10.0
libtpu: 0.0.40
codegen_flags: <defaults>
</compile_context>

<pallas_src>
import math

import jax
import jax.numpy as jnp
from jax.experimental import pallas as pl
from jax.experimental.pallas import tpu as pltpu

FEAT_DIM = 128
HIDDEN1 = 256
HIDDEN2 = 128
EPS = 1e-12  # F.normalize default eps


def _round_up(x, m):
    return ((x + m - 1) // m) * m


def _make_kernel(T_total, T_packed, tt, needs_mask):
    inv_t = 1.0 / float(T_total)

    def kernel(x_ref, w1_ref, b1_ref, w2_ref, b2_ref, w3_ref, b3_ref, o_ref, acc_ref):
        t = pl.program_id(1)
        last = pl.num_programs(1) - 1

        # Zero the per-batch-tile accumulator at the first sequence tile.
        @pl.when(t == 0)
        def _():
            acc_ref[...] = jnp.zeros_like(acc_ref)

        # f32 accumulation regardless of the HBM streaming dtype (bf16 upcast here).
        x = x_ref[...].astype(jnp.float32)  # (TB, TT, PD)

        if needs_mask:
            # Hot path: every tile except the last is full -> plain unmasked add.
            @pl.when(t < last)
            def _():
                acc_ref[...] += jnp.sum(x, axis=1)

            # Cold path (runs once): last tile may extend past T_packed -> zero padded rows.
            @pl.when(t == last)
            def _():
                row = t * tt + jax.lax.broadcasted_iota(jnp.int32, x.shape, dimension=1)
                acc_ref[...] += jnp.sum(jnp.where(row < T_packed, x, 0.0), axis=1)
        else:
            acc_ref[...] += jnp.sum(x, axis=1)

        # Epilogue: mean -> MLP -> projector -> L2 normalize, once per batch tile.
        @pl.when(t == last)
        def _():
            # w1 is pre-tiled k times along its input dim, so the packed sub-chunks are
            # folded inside this matmul (no in-kernel reshape / lane slicing needed).
            xm = acc_ref[...] * inv_t  # (TB, PD)

            h1 = jnp.dot(xm, w1_ref[...], preferred_element_type=jnp.float32) + b1_ref[...]
            h1 = jnp.maximum(h1, 0.0)
            h2 = jnp.dot(h1, w2_ref[...], preferred_element_type=jnp.float32) + b2_ref[...]
            h2 = jnp.maximum(h2, 0.0)
            z = jnp.dot(h2, w3_ref[...], preferred_element_type=jnp.float32) + b3_ref[...]

            # F.normalize(z, dim=1): z / max(||z||, eps) == z * rsqrt(max(||z||^2, eps^2))
            sumsq = jnp.sum(z * z, axis=1, keepdims=True)
            inv_norm = jax.lax.rsqrt(jnp.maximum(sumsq, EPS * EPS))
            o_ref[...] = (z * inv_norm).astype(o_ref.dtype)

    return kernel


def _choose_pack(T, D):
    """Smallest k with k*D a multiple of 128 lanes, provided k divides T; else 1."""
    if D % 128 == 0:
        return 1
    k = 128 // math.gcd(D, 128)
    return k if (T % k == 0) else 1


def _choose_tiles(B, T_packed, packed_d, x_itemsize, x_buf_budget_bytes=8 * 1024 * 1024):
    # Batch tile: MXU-friendly 256 for big batches; otherwise split into >= 2 tiles
    # (multiple of 8 rows) so the "parallel" batch axis can shard across v7x's two TCs.
    if B >= 512:
        tb = 256
    elif B >= 16:
        tb = min(B, _round_up(pl.cdiv(B, 2), 8))
    else:
        tb = B
    # Pad-aware row size: the last dim occupies round_up(., 128) lanes in VMEM.
    row_bytes = tb * _round_up(packed_d, 128) * x_itemsize
    tt = max(1, x_buf_budget_bytes // row_bytes)
    if tt >= T_packed:
        tt = T_packed
    else:
        tt = max(8, (tt // 8) * 8)  # keep the sublane dim a multiple of 8
    return tb, tt


def stat_encoder(x, w1, b1, w2, b2, w3, b3, *, tb=None, tt=None, pack=True):
    """x: (B, T, D) float32/bfloat16; weights as (in, out); biases as (1, out)."""
    B, T, D = x.shape
    proj_dim = w3.shape[1]

    # Lane-pack the feature axis: (B, T, D) -> (B, T//k, k*D) is a free contiguous reshape;
    # the k sub-chunks fold inside the first matmul via a k-tiled w1.
    k = _choose_pack(T, D) if pack else 1
    if k > 1:
        x = x.reshape(B, T // k, k * D)
        w1 = jnp.tile(w1, (k, 1))
    T_packed, packed_d = x.shape[1], x.shape[2]

    auto_tb, auto_tt = _choose_tiles(B, T_packed, packed_d, x.dtype.itemsize)
    tb = auto_tb if tb is None else tb
    tt = auto_tt if tt is None else min(tt, _round_up(T_packed, 8))

    grid = (pl.cdiv(B, tb), pl.cdiv(T_packed, tt))
    needs_mask = (T_packed % tt) != 0

    def const(*shape):
        # Constant block index -> loaded once, stays resident across grid steps.
        return pl.BlockSpec(shape, lambda b, t: tuple(0 for _ in shape))

    # Pad-aware VMEM estimate; raise the scoped limit only when the default could bind
    # (v5e default is 16 MiB). Cap well under v7x's 64 MiB physical VMEM.
    lane = lambda n: _round_up(n, 128)
    x_block_bytes = tb * tt * lane(packed_d) * x.dtype.itemsize
    w_bytes = 4 * (packed_d * HIDDEN1 + HIDDEN1 * HIDDEN2 + HIDDEN2 * lane(proj_dim)
                   + HIDDEN1 + HIDDEN2 + lane(proj_dim))
    est = (2 * x_block_bytes            # double-buffered x stream
           + 2 * w_bytes                # weights (default double-buffered, ~0.5 MiB)
           + 2 * tb * lane(proj_dim) * 4
           + tb * lane(packed_d) * 4)   # accumulator scratch
    params = dict(dimension_semantics=("parallel", "arbitrary"))
    if est > 12 * 1024 * 1024:
        params["vmem_limit_bytes"] = min(est + est // 4 + (2 << 20), 48 << 20)

    return pl.pallas_call(
        _make_kernel(T, T_packed, tt, needs_mask),
        out_shape=jax.ShapeDtypeStruct((B, proj_dim), jnp.float32),
        grid_spec=pltpu.PrefetchScalarGridSpec(
            num_scalar_prefetch=0,
            grid=grid,
            in_specs=[
                pl.BlockSpec((tb, tt, packed_d), lambda b, t: (b, t, 0)),  # x (pipelined)
                const(packed_d, HIDDEN1),    # w1 (possibly k-tiled along input dim)
                const(1, HIDDEN1),           # b1
                const(HIDDEN1, HIDDEN2),     # w2
                const(1, HIDDEN2),           # b2
                const(HIDDEN2, proj_dim),    # w3
                const(1, proj_dim),          # b3
            ],
            out_specs=pl.BlockSpec((tb, proj_dim), lambda b, t: (b, 0)),
            scratch_shapes=[pltpu.VMEM((tb, packed_d), jnp.float32)],  # sequence-sum acc
        ),
        compiler_params=pltpu.CompilerParams(**params),
    )(x, w1, b1, w2, b2, w3, b3)


def reference(x, w1, b1, w2, b2, w3, b3):
    xm = x.mean(axis=1)
    h1 = jnp.maximum(xm @ w1 + b1[0], 0.0)
    h2 = jnp.maximum(h1 @ w2 + b2[0], 0.0)
    z = h2 @ w3 + b3[0]
    n = jnp.maximum(jnp.linalg.norm(z, axis=1, keepdims=True), EPS)
    return z / n


if __name__ == "__main__":
    key = jax.random.PRNGKey(0)
    D = 32
    proj_dim = FEAT_DIM

    ks = jax.random.split(key, 8)
    # Parameters: (in, out) layout == transpose of PyTorch nn.Linear's (out, in) weight.
    w1 = jax.random.normal(ks[1], (D, HIDDEN1), dtype=jnp.float32) * (1.0 / jnp.sqrt(D))
    b1 = jax.random.normal(ks[2], (1, HIDDEN1), dtype=jnp.float32) * 0.01
    w2 = jax.random.normal(ks[3], (HIDDEN1, HIDDEN2), dtype=jnp.float32) * (1.0 / jnp.sqrt(HIDDEN1))
    b2 = jax.random.normal(ks[4], (1, HIDDEN2), dtype=jnp.float32) * 0.01
    w3 = jax.random.normal(ks[5], (HIDDEN2, proj_dim), dtype=jnp.float32) * (1.0 / jnp.sqrt(HIDDEN2))
    b3 = jax.random.normal(ks[6], (1, proj_dim), dtype=jnp.float32) * 0.01
    params = (w1, b1, w2, b2, w3, b3)

    # 1) Small batch/seq, auto tiles: lane-packed path (k=4), 2 batch tiles, single seq tile.
    x1 = jax.random.normal(ks[0], (16, 20, D), dtype=jnp.float32)
    ref1 = reference(x1, *params)
    out1 = jax.block_until_ready(stat_encoder(x1, *params))
    assert out1.shape == (16, proj_dim)
    assert jnp.allclose(out1, ref1, atol=1e-5, rtol=1e-5), "mismatch (auto tiles, packed)"

    # 2) Longer sequence, explicit small tiles: multi-tile packed streaming with a masked
    #    partial last seq tile (T_packed = 18, tt = 8 -> 3 seq tiles, last partial).
    x2 = jax.random.normal(ks[7], (16, 72, D), dtype=jnp.float32)
    ref2 = reference(x2, *params)
    out2 = jax.block_until_ready(stat_encoder(x2, *params, tb=8, tt=8))
    assert jnp.allclose(out2, ref2, atol=1e-5, rtol=1e-5), "mismatch (tiled, packed, masked)"

    # 3) Unpacked fallback path (pack=False) with a masked partial last tile (72 % 32 != 0).
    out3 = jax.block_until_ready(stat_encoder(x2, *params, tb=8, tt=32, pack=False))
    assert jnp.allclose(out3, ref2, atol=1e-5, rtol=1e-5), "mismatch (unpacked, masked)"

    # 4) bf16 HBM stream (f32 accumulation inside the kernel).
    x1_bf16 = x1.astype(jnp.bfloat16)
    ref4 = reference(x1_bf16.astype(jnp.float32), *params)
    out4 = jax.block_until_ready(stat_encoder(x1_bf16, *params))
    assert jnp.allclose(out4, ref4, atol=1e-4, rtol=1e-4), "mismatch (bf16 stream)"

    print("KERNEL_OK")
</pallas_src>

<mosaic_0001>
module attributes {stable_mosaic.version = 11 : i64} {
  func.func @kernel(%arg0: i32, %arg1: i32, %arg2: memref<8x5x128xf32, #tpu.memory_space<vmem>>, %arg3: memref<128x256xf32, #tpu.memory_space<vmem>>, %arg4: memref<1x256xf32, #tpu.memory_space<vmem>>, %arg5: memref<256x128xf32, #tpu.memory_space<vmem>>, %arg6: memref<1x128xf32, #tpu.memory_space<vmem>>, %arg7: memref<128x128xf32, #tpu.memory_space<vmem>>, %arg8: memref<1x128xf32, #tpu.memory_space<vmem>>, %arg9: memref<8x128xf32, #tpu.memory_space<vmem>>, %arg10: memref<8x128xf32, #tpu.memory_space<vmem>>) attributes {dimension_semantics = [#tpu.dimension_semantics<parallel>, #tpu.dimension_semantics<arbitrary>], iteration_bounds = array<i64: 2, 1>, scalar_prefetch = 0 : i64, scratch_operands = 1 : i64, tpu.core_type = #tpu.core_type<tc>, window_params = [{transform_indices = @transform_0, window_bounds = array<i64: 8, 5, 128>}, {pipeline_mode = #tpu.pipeline_mode<synchronous>, transform_indices = @transform_1, window_bounds = array<i64: 128, 256>}, {pipeline_mode = #tpu.pipeline_mode<synchronous>, transform_indices = @transform_2, window_bounds = array<i64: 1, 256>}, {pipeline_mode = #tpu.pipeline_mode<synchronous>, transform_indices = @transform_3, window_bounds = array<i64: 256, 128>}, {pipeline_mode = #tpu.pipeline_mode<synchronous>, transform_indices = @transform_4, window_bounds = array<i64: 1, 128>}, {pipeline_mode = #tpu.pipeline_mode<synchronous>, transform_indices = @transform_5, window_bounds = array<i64: 128, 128>}, {pipeline_mode = #tpu.pipeline_mode<synchronous>, transform_indices = @transform_6, window_bounds = array<i64: 1, 128>}, {transform_indices = @transform_7, window_bounds = array<i64: 8, 128>}]} {
    %c0_i32 = arith.constant 0 : i32
    %0 = arith.cmpi eq, %arg1, %c0_i32 : i32
    %1 = arith.extui %0 : i1 to i32
    %c0_i32_0 = arith.constant 0 : i32
    %2 = arith.cmpi ne, %1, %c0_i32_0 : i32
    scf.if %2 {
      %cst_9 = arith.constant 0.000000e+00 : f32
      %11 = vector.broadcast %cst_9 : f32 to vector<8x128xf32>
      %c0_10 = arith.constant 0 : index
      %c0_11 = arith.constant 0 : index
      %12 = vector.load %arg10[%c0_10, %c0_11] : memref<8x128xf32, #tpu.memory_space<vmem>>, vector<8x128xf32>
      tpu.vector_store %arg10[%c0_10, %c0_11], %11 {strides = array<i32>} : memref<8x128xf32, #tpu.memory_space<vmem>>, vector<8x128xf32>,
    } else {
    }
    %c0 = arith.constant 0 : index
    %c0_1 = arith.constant 0 : index
    %c0_2 = arith.constant 0 : index
    %3 = vector.load %arg2[%c0, %c0_1, %c0_2] : memref<8x5x128xf32, #tpu.memory_space<vmem>>, vector<8x5x128xf32>
    %c0_3 = arith.constant 0 : index
    %c0_4 = arith.constant 0 : index
    %4 = vector.load %arg10[%c0_3, %c0_4] : memref<8x128xf32, #tpu.memory_space<vmem>>, vector<8x128xf32>
    %cst = arith.constant dense<0.000000e+00> : vector<8x128xf32>
    %5 = vector.multi_reduction <add>, %3, %cst [1] : vector<8x5x128xf32> to vector<8x128xf32>
    %6 = arith.addf %4, %5 : vector<8x128xf32>
    %c0_5 = arith.constant 0 : index
    %c0_6 = arith.constant 0 : index
    %7 = vector.load %arg10[%c0_5, %c0_6] : memref<8x128xf32, #tpu.memory_space<vmem>>, vector<8x128xf32>
    tpu.vector_store %arg10[%c0_5, %c0_6], %6 {strides = array<i32>} : memref<8x128xf32, #tpu.memory_space<vmem>>, vector<8x128xf32>,
    %c0_i32_7 = arith.constant 0 : i32
    %8 = arith.cmpi eq, %arg1, %c0_i32_7 : i32
    %9 = arith.extui %8 : i1 to i32
    %c0_i32_8 = arith.constant 0 : i32
    %10 = arith.cmpi ne, %9, %c0_i32_8 : i32
    scf.if %10 {
      %c0_9 = arith.constant 0 : index
      %c0_10 = arith.constant 0 : index
      %11 = vector.load %arg10[%c0_9, %c0_10] : memref<8x128xf32, #tpu.memory_space<vmem>>, vector<8x128xf32>
      %cst_11 = arith.constant 5.000000e-02 : f32
      %12 = vector.broadcast %cst_11 : f32 to vector<8x128xf32>
      %13 = arith.mulf %11, %12 : vector<8x128xf32>
      %c0_12 = arith.constant 0 : index
      %c0_13 = arith.constant 0 : index
      %14 = vector.load %arg3[%c0_12, %c0_13] : memref<128x256xf32, #tpu.memory_space<vmem>>, vector<128x256xf32>
      %cst_14 = arith.constant dense<0.000000e+00> : vector<8x256xf32>
      %15 = tpu.matmul %13, %14, %cst_14 {dimension_numbers = #tpu.dot_dimension_numbers<[1], [0], [0], [1], [0, 0, 1, 1], [], []>} : vector<8x128xf32>, vector<128x256xf32>, vector<8x256xf32> -> vector<8x256xf32>
      %c0_15 = arith.constant 0 : index
      %c0_16 = arith.constant 0 : index
      %16 = vector.load %arg4[%c0_15, %c0_16] : memref<1x256xf32, #tpu.memory_space<vmem>>, vector<1x256xf32>
      %17 = vector.broadcast %16 : vector<1x256xf32> to vector<8x256xf32>
      %18 = arith.addf %15, %17 : vector<8x256xf32>
      %cst_17 = arith.constant 0.000000e+00 : f32
      %19 = vector.broadcast %cst_17 : f32 to vector<8x256xf32>
      %20 = arith.maximumf %18, %19 : vector<8x256xf32>
      %c0_18 = arith.constant 0 : index
      %c0_19 = arith.constant 0 : index
      %21 = vector.load %arg5[%c0_18, %c0_19] : memref<256x128xf32, #tpu.memory_space<vmem>>, vector<256x128xf32>
      %cst_20 = arith.constant dense<0.000000e+00> : vector<8x128xf32>
      %22 = tpu.matmul %20, %21, %cst_20 {dimension_numbers = #tpu.dot_dimension_numbers<[1], [0], [0], [1], [0, 0, 1, 1], [], []>} : vector<8x256xf32>, vector<256x128xf32>, vector<8x128xf32> -> vector<8x128xf32>
      %c0_21 = arith.constant 0 : index
      %c0_22 = arith.constant 0 : index
      %23 = vector.load %arg6[%c0_21, %c0_22] : memref<1x128xf32, #tpu.memory_space<vmem>>, vector<1x128xf32>
      %24 = vector.broadcast %23 : vector<1x128xf32> to vector<8x128xf32>
      %25 = arith.addf %22, %24 : vector<8x128xf32>
      %cst_23 = arith.constant 0.000000e+00 : f32
      %26 = vector.broadcast %cst_23 : f32 to vector<8x128xf32>
      %27 = arith.maximumf %25, %26 : vector<8x128xf32>
      %c0_24 = arith.constant 0 : index
      %c0_25 = arith.constant 0 : index
      %28 = vector.load %arg7[%c0_24, %c0_25] : memref<128x128xf32, #tpu.memory_space<vmem>>, vector<128x128xf32>
      %cst_26 = arith.constant dense<0.000000e+00> : vector<8x128xf32>
      %29 = tpu.matmul %27, %28, %cst_26 {dimension_numbers = #tpu.dot_dimension_numbers<[1], [0], [0], [1], [0, 0, 1, 1], [], []>} : vector<8x128xf32>, vector<128x128xf32>, vector<8x128xf32> -> vector<8x128xf32>
      %c0_27 = arith.constant 0 : index
      %c0_28 = arith.constant 0 : index
      %30 = vector.load %arg8[%c0_27, %c0_28] : memref<1x128xf32, #tpu.memory_space<vmem>>, vector<1x128xf32>
      %31 = vector.broadcast %30 : vector<1x128xf32> to vector<8x128xf32>
      %32 = arith.addf %29, %31 : vector<8x128xf32>
      %33 = arith.mulf %32, %32 : vector<8x128xf32>
      %cst_29 = arith.constant dense<0.000000e+00> : vector<8xf32>
      %34 = vector.multi_reduction <add>, %33, %cst_29 [1] : vector<8x128xf32> to vector<8xf32>
      %35 = vector.shape_cast %34 : vector<8xf32> to vector<8x1xf32>
      %cst_30 = arith.constant 1.000000e-24 : f32
      %36 = vector.broadcast %cst_30 : f32 to vector<8x1xf32>
      %37 = arith.maximumf %35, %36 : vector<8x1xf32>
      %38 = math.rsqrt %37 : vector<8x1xf32>
      %39 = vector.broadcast %38 : vector<8x1xf32> to vector<8x128xf32>
      %40 = arith.mulf %32, %39 : vector<8x128xf32>
      %c0_31 = arith.constant 0 : index
      %c0_32 = arith.constant 0 : index
      %41 = vector.load %arg9[%c0_31, %c0_32] : memref<8x128xf32, #tpu.memory_space<vmem>>, vector<8x128xf32>
      tpu.vector_store %arg9[%c0_31, %c0_32], %40 {strides = array<i32>} : memref<8x128xf32, #tpu.memory_space<vmem>>, vector<8x128xf32>,
    } else {
    }
    return
  }
  func.func @transform_0(%arg0: i32, %arg1: i32) -> (i32, i32, i32) {
    %c0_i32 = arith.constant 0 : i32
    %c0_i32_0 = arith.constant 0 : i32
    return %arg0, %arg1, %c0_i32 : i32, i32, i32
  }
  func.func @transform_1(%arg0: i32, %arg1: i32) -> (i32, i32) {
    %c0_i32 = arith.constant 0 : i32
    %c0_i32_0 = arith.constant 0 : i32
    %c0_i32_1 = arith.constant 0 : i32
    return %c0_i32, %c0_i32_0 : i32, i32
  }
  func.func @transform_2(%arg0: i32, %arg1: i32) -> (i32, i32) {
    %c0_i32 = arith.constant 0 : i32
    %c0_i32_0 = arith.constant 0 : i32
    %c0_i32_1 = arith.constant 0 : i32
    return %c0_i32, %c0_i32_0 : i32, i32
  }
  func.func @transform_3(%arg0: i32, %arg1: i32) -> (i32, i32) {
    %c0_i32 = arith.constant 0 : i32
    %c0_i32_0 = arith.constant 0 : i32
    %c0_i32_1 = arith.constant 0 : i32
    return %c0_i32, %c0_i32_0 : i32, i32
  }
  func.func @transform_4(%arg0: i32, %arg1: i32) -> (i32, i32) {
    %c0_i32 = arith.constant 0 : i32
    %c0_i32_0 = arith.constant 0 : i32
    %c0_i32_1 = arith.constant 0 : i32
    return %c0_i32, %c0_i32_0 : i32, i32
  }
  func.func @transform_5(%arg0: i32, %arg1: i32) -> (i32, i32) {
    %c0_i32 = arith.constant 0 : i32
    %c0_i32_0 = arith.constant 0 : i32
    %c0_i32_1 = arith.constant 0 : i32
    return %c0_i32, %c0_i32_0 : i32, i32
  }
  func.func @transform_6(%arg0: i32, %arg1: i32) -> (i32, i32) {
    %c0_i32 = arith.constant 0 : i32
    %c0_i32_0 = arith.constant 0 : i32
    %c0_i32_1 = arith.constant 0 : i32
    return %c0_i32, %c0_i32_0 : i32, i32
  }
  func.func @transform_7(%arg0: i32, %arg1: i32) -> (i32, i32) {
    %c0_i32 = arith.constant 0 : i32
    %c0_i32_0 = arith.constant 0 : i32
    return %arg0, %c0_i32 : i32, i32
  }
}

</mosaic_0001>

<bundles_post_ra>
// kernel: tpu_custom_call.1
= control target key start
LH: loop header
LB: loop body
LE: loop exit
PB: predicated region body
PF: predicated region fallthrough
CT: control target
= control target key end

     0   :  { %12 = vsyncpa [#allocation4], 0  ;;  %s1472_s0 = inlined_call_operand.vmem [shape: f32[16,5,128], index: 0, kind: input, shape index: {}]   ;;  %s1473_s1 = inlined_call_operand.hbm [shape: f32[128,256], index: 1, kind: input, shape index: {}]   ;;  %s1474_s2 = inlined_call_operand.vmem [shape: f32[1,256], index: 2, kind: input, shape index: {}]   ;;  %s1475_s3 = inlined_call_operand.hbm [shape: f32[256,128], index: 3, kind: input, shape index: {}]   ;;  %s1476_s4 = inlined_call_operand.vmem [shape: f32[1,128], index: 4, kind: input, shape index: {}]   ;;  %s1477_s5 = inlined_call_operand.vmem [shape: f32[128,128], index: 5, kind: input, shape index: {}]   ;;  %s1478_s6 = inlined_call_operand.vmem [shape: f32[1,128], index: 6, kind: input, shape index: {}]   ;;  %s1479_s7 = inlined_call_operand.hbm [shape: f32[16,128], index: 7, kind: output, shape index: {}]  }
   0x1   :  { %13 = vsyncpa [#allocation7], 0 }
   0x2   :  { %14 = vsyncpa [#allocation5], 0 }
   0x3   :  { %16 = vsyncpa [#allocation5 + $0x1], 0  ;;  %s1242_s24 = smov 0   ;;  %s1244_s25 = smov 0  }
   0x4   :  { %s1246_s26 = smov 0   ;;  %s1248_s27 = smov 0  }
   0x5   :  { %s1250_s28 = smov 0   ;;  %s1252_s29 = smov 0  }
   0x6 LB: > { %s866_s30 = sadd.s32 4294967295, %s1191_s29   ;;  %s867_s8 = sadd.s32 4294967294, %s1191_s29   ;;  %s1191_s29 = sphi %s1252_s29, %s22_s29   ;;  %s1187_s28 = sphi %s1250_s28, %s1495_s28   ;;  %s1183_s27 = sphi %s1248_s27, %s1494_s27   ;;  %s1179_s26 = sphi %s1246_s26, %s1493_s26   ;;  %s1175_s25 = sphi %s1244_s25, %s1492_s25   ;;  %s1171_s24 = sphi %s1242_s24, %s1491_s24  }
   0x7   : > { %s34_s9 = sadd.s32 1, %s1187_s28  ;;  %s195_s10 = sadd.s32 1, %s1179_s26 }
   0x8   : > { %p36_p0 = scmp.ge.s32.totalorder %s34_s9, 2  ;;  %p205_p1 = scmp.ne.s32.totalorder %s1179_s26, %s1175_s25 }
   0x9   : > { %p206_p2 = scmp.eq.s32.totalorder %s866_s30, 1  ;;  %p211_p3 = scmp.ne.s32.totalorder %s1175_s25, %s1171_s24 }
   0xa   : > { %s1497_s9 = smov (%p36_p0, %s34_s9), 0  ;;  %p212_p5 = scmp.eq.s32.totalorder %s867_s8, 1 }
   0xb   : > { %1482 = sst [smem:[#allocation12_spill]] %s1497_s9  ;;  %p1282_p4 = por %p206_p2, %p205_p1 }
   0xc   : > { %s192_s12 = ssub.s32 %s1187_s28, %s1497_s9  ;;  %p868_p6 = scmp.ge.s32.totalorder %s1191_s29, 1 }
   0xd   : > { %s1483_s11 = scalar_select %p1282_p4, 1, 0 }
   0xe   : > { %p193_p7 = scmp.eq.s32.totalorder %s192_s12, 0  ;;  %p1289_p8 = por %p212_p5, %p211_p3 }
   0xf   : > { %p219_p9 = scmp.lt.s32.totalorder %s1191_s29, 3  ;;  %p1301_p11 = scmp.eq.s32.totalorder %s866_s30, 0 }
  0x10   : > { %s1484_s13 = scalar_select %p1289_p8, 1, 0 }
  0x11   : > { %s1295_s14 = scalar_select %p193_p7, %s1179_s26, %s195_s10  }
  0x12   : > { %p1297_p10 = pnand %p868_p6, %p219_p9  ;;  %s1193_s17 = smov [#allocation3]  }
  0x13   : > { %s231_s18 = sshll.u32 %s1193_s17, 4  ;;  %s1194_s20 = smov [#allocation6]   ;;  %s232_s18 = int_to_ptr.vmem [resolvable:$true] %s231_s18 }
  0x14   : > { %p981_p12 = pneg %p1297_p10  ;;  %s247_s21 = sshll.u32 %s1194_s20, 4  ;;  %s248_s21 = int_to_ptr.vmem [resolvable:$true] %s247_s21 }
  0x15   : > { %s1066_s22 = scalar_lea.vmem %s232_s18, 4096  ;;  %p1074_p5 = scmp.lt.s32.totalorder %s232_s18, %s232_s18 }
  0x16   : > { %p1309_p13 = pnand %p1301_p11, %p981_p12  ;;  %p1067_p1 = scmp.ne.s32.totalorder %s232_s18, %s1066_s22 }
  0x17   : > { %p1075_p6 = scmp.lt.s32.totalorder %s1066_s22, %s1066_s22 }
  0x18   : > { %p1057_p0 = pneg %p1309_p13 }
  0x19   : > { %p1076_p7 = por %p1075_p6, %p1074_p5 }
  0x1a   : > { %p1069_p2 = pnand %p1067_p1, %p1057_p0 }
  0x1c   : > { %p1070_p3 = pneg %p1069_p2 }
  0x1e   : > { %p1077_p9 = pnand %p1076_p7, %p1070_p3 }
  0x20   : > { %1080 = shalt.err (!%p1077_p9)
}
  0x21   : > { %s1195_s23 = smov 256   ;;  %s1196_s30 = smov 16  }
  0x22   : > { %984 = dma.hbm_to_vmem [thread:$0]  (!%p1309_p13), %s1473_s1, 4096, %s232_s18, [#allocation4], %s1195_s23, %s1195_s23, %s1196_s30  }
  0x23   : > { %s1092_s12 = scalar_lea.vmem %s248_s21, 4096  ;;  %p1100_p8 = scmp.lt.s32.totalorder %s248_s21, %s248_s21 }
  0x24   : > { %p1093_p12 = scmp.ne.s32.totalorder %s248_s21, %s1092_s12  ;;  %p1101_p4 = scmp.lt.s32.totalorder %s1092_s12, %s1092_s12 }
  0x26   : > { %p1095_p1 = pnand %p1093_p12, %p1057_p0  ;;  %p1102_p5 = por %p1101_p4, %p1100_p8 }
  0x28   : > { %p1096_p2 = pneg %p1095_p1 }
  0x2a   : > { %p1103_p3 = pnand %p1102_p5, %p1096_p2 }
  0x2c   : > { %1106 = shalt.err (!%p1103_p3)
}
  0x2d   : > { %s1197_s17 = smov 128   ;;  %s1198_s20 = smov 8  }
  0x2e   : > { %987 = dma.hbm_to_vmem [thread:$0]  (!%p1309_p13), %s1475_s3, 4096, %s248_s21, [#allocation7], %s1197_s17, %s1197_s17, %s1198_s20  }
  0x2f   : > { %284 = sbr.rel (%p1297_p10) target bundleno = 855 (0x357), region = 48 }
  0x34   : > { %1158 = dma.done.wait (%p1301_p11), [#allocation4], 4096  }
  0x35   : > { %1160 = vsyncadd (%p1301_p11), [#allocation4], 4294963200 }
  0x36   : > { %1162 = dma.done.wait (%p1301_p11), [#allocation7], 4096  }
  0x37   : > { %1164 = vsyncadd (%p1301_p11), [#allocation7], 4294963200  ;;  %s876_s18 = sshll.u32 %s1183_s27, 3  ;;  %v1199_v0 = vmov 0.0   ;;  %v464_v1 = vld [vmem:[#allocation3 + $0xf8] sm:$0xff]  ;;  %v463_v2 = vld [vmem:[#allocation3 + $0xf0] sm:$0xff] }
  0x38   : > { %541 = vmatprep.mubr.f32.mxu0 %v1199_v0  ;;  %p324_p4 = scmp.lt.s32.totalorder %s876_s18, 15  ;;  %v462_v3 = vld [vmem:[#allocation3 + $0xe8] sm:$0xff]  ;;  %477 = vmatprep.subr.mxu0 %v464_v1  ;;  %v461_v4 = vld [vmem:[#allocation3 + $0xe0] sm:$0xff]  ;;  %v460_v5 = vld [vmem:[#allocation3 + $0xd8] sm:$0xff]  ;;  %vm346_vm0 = vcmask 1044480   ;;  %vm411_vm1 = vcmask 1041409  }
  0x39   : > { %478 = vmatpush1.msra.mxu0 %v463_v2  ;;  %v459_v6 = vld [vmem:[#allocation3 + $0xd0] sm:$0xff]  ;;  %v458_v7 = vld [vmem:[#allocation3 + $0xc8] sm:$0xff]  ;;  %v457_v8 = vld [vmem:[#allocation3 + $0xc0] sm:$0xff]  ;;  %vm413_vm2 = vcmask 1042434   ;;  %vm415_vm3 = vcmask 1043459   ;;  %vm417_vm4 = vcmask 1044484  }
  0x3a   : > { %s1499_s18 = smov (!%p324_p4, %s876_s18), 15  ;;  %479 = vmatprep.subr.mxu0 %v462_v3  ;;  %v456_v9 = vld [vmem:[#allocation3 + $0xb8] sm:$0xff]  ;;  %v455_v10 = vld [vmem:[#allocation3 + $0xb0] sm:$0xff]  ;;  %v454_v11 = vld [vmem:[#allocation3 + $0xa8] sm:$0xff]  ;;  %vm419_vm5 = vcmask 1045509   ;;  %vm421_vm6 = vcmask 1046534  }
  0x3b   : > { %480 = vmatpush1.msra.mxu0 %v461_v4  ;;  %s877_s9 = sshll.u32 %s1499_s18, 3  ;;  %v453_v12 = vld [vmem:[#allocation3 + $0xa0] sm:$0xff]  ;;  %v452_v13 = vld [vmem:[#allocation3 + $0x98] sm:$0xff]  ;;  %v451_v14 = vld [vmem:[#allocation3 + $0x90] sm:$0xff]  ;;  %vm423_vm7 = vcmask 1047559   ;;  %vm1200_vm8 = vmmov 0  }
  0x3c   : > { %481 = vmatprep.subr.mxu0 %v460_v5  ;;  %s330_s19 = scalar_lea.vmem %s1472_s0, %s877_s9  ;;  %v450_v15 = vld [vmem:[#allocation3 + $0x88] sm:$0xff]  ;;  %v449_v17 = vld [vmem:[#allocation3 + $0x80] sm:$0xff]  ;;  %v448_v21 = vld [vmem:[#allocation3 + $0x78] sm:$0xff]  ;;  %s320_s9 = sand.u32 1, %s1175_s25  }
  0x3d   : > { %482 = vmatpush1.msra.mxu0 %v459_v6  ;;  %v337_v16 = vld [vmem:[%s330_s19] sm:$0x1f]  ;;  %v338_v18 = vld [vmem:[%s330_s19 + $0x8] sm:$0x1f]  ;;  %v339_v19 = vld [vmem:[%s330_s19 + $0x10] sm:$0x1f] }
  0x3e   : > { %483 = vmatprep.subr.mxu0 %v458_v7  ;;  %v340_v20 = vld [vmem:[%s330_s19 + $0x18] sm:$0x1f]  ;;  %v341_v22 = vld [vmem:[%s330_s19 + $0x20] sm:$0x1f]  ;;  %v342_v23 = vld [vmem:[%s330_s19 + $0x28] sm:$0x1f] }
  0x3f   : > { %484 = vmatpush1.msra.mxu0 %v457_v8  ;;  %v343_v24 = vld [vmem:[%s330_s19 + $0x30] sm:$0x1f]  ;;  %v344_v25 = vld [vmem:[%s330_s19 + $0x38] sm:$0x1f]  ;;  %v347_v26 = vsel %vm346_vm0, %v337_v16, 0.0  ;;  %v354_v27 = vsel %vm346_vm0, %v338_v18, 0.0 }
  0x40   : > { %485 = vmatprep.subr.mxu0 %v456_v9  ;;  %v361_v28 = vsel %vm346_vm0, %v339_v19, 0.0  ;;  %v368_v29 = vsel %vm346_vm0, %v340_v20, 0.0  ;;  %v348_v30 = vrot.slane %v347_v26, 4  ;;  %v355_v31 = vrot.slane %v354_v27, 4  ;;  %v581_v34 = vld [vmem:[#allocation6 + $0xf8] sm:$0xff]  ;;  %v447_v36 = vld [vmem:[#allocation3 + $0x70] sm:$0xff] }
  0x41   : > { %486 = vmatpush1.msra.mxu0 %v455_v10  ;;  %v362_v32 = vrot.slane %v361_v28, 4  ;;  %v369_v33 = vrot.slane %v368_v29, 4  ;;  %v565_v35 = vld [vmem:[#allocation6 + $0x78] sm:$0xff]  ;;  %v375_v37 = vsel %vm346_vm0, %v341_v22, 0.0  ;;  %v382_v38 = vsel %vm346_vm0, %v342_v23, 0.0  ;;  %884 = vmatprep.subr.mxu1 %v581_v34  ;;  %v580_v41 = vld [vmem:[#allocation6 + $0xf0] sm:$0xff] }
  0x42   : > { %487 = vmatprep.subr.mxu0 %v454_v11  ;;  %v389_v39 = vsel %vm346_vm0, %v343_v24, 0.0  ;;  %v396_v40 = vsel %vm346_vm0, %v344_v25, 0.0  ;;  %v446_v42 = vld [vmem:[#allocation3 + $0x68] sm:$0xff]  ;;  %v349_v43 = vadd.f32 %v348_v30, %v347_v26  ;;  %v356_v44 = vadd.f32 %v355_v31, %v354_v27  ;;  %v445_v47 = vld [vmem:[#allocation3 + $0x60] sm:$0xff]  ;;  %885 = vmatpush3.msra.mxu1 %v565_v35  ;;  %v444_v52 = vld [vmem:[#allocation3 + $0x58] sm:$0xff]  ;;  %s875_s15 = sshll.u32 %s320_s9, 3 }
  0x43   : > { %488 = vmatpush1.msra.mxu0 %v453_v12  ;;  %v363_v45 = vadd.f32 %v362_v32, %v361_v28  ;;  %v370_v46 = vadd.f32 %v369_v33, %v368_v29  ;;  %v376_v48 = vrot.slane %v375_v37, 4  ;;  %v383_v49 = vrot.slane %v382_v38, 4  ;;  %886 = vmatprep.subr.mxu1 %v580_v41  ;;  %v564_v57 = vld [vmem:[#allocation6 + $0x70] sm:$0xff]  ;;  %v579_v63 = vld [vmem:[#allocation6 + $0xe8] sm:$0xff]  ;;  %v441_v6 = vld [vmem:[#allocation3 + $0x40] sm:$0xff]  ;;  %s881_s16 = sshll.u32 %s1183_s27, 7 }
  0x44   : > { %489 = vmatprep.subr.mxu0 %v452_v13  ;;  %v390_v50 = vrot.slane %v389_v39, 4  ;;  %v397_v51 = vrot.slane %v396_v40, 4  ;;  %v350_v53 = vrot.slane %v349_v43, 2  ;;  %v357_v54 = vrot.slane %v356_v44, 2  ;;  %v443_v58 = vld [vmem:[#allocation3 + $0x50] sm:$0xff]  ;;  %v442_v1 = vld [vmem:[#allocation3 + $0x48] sm:$0xff]  ;;  %887 = vmatpush3.msra.mxu1 %v564_v57  ;;  %s772_s8 = scalar_lea.hbm %s1479_s7, %s881_s16 }
  0x45   : > { %490 = vmatpush1.msra.mxu0 %v451_v14  ;;  %v364_v55 = vrot.slane %v363_v45, 2  ;;  %v371_v56 = vrot.slane %v370_v46, 2  ;;  %v377_v59 = vadd.f32 %v376_v48, %v375_v37  ;;  %v384_v60 = vadd.f32 %v383_v49, %v382_v38  ;;  %v440_v11 = vld [vmem:[#allocation3 + $0x38] sm:$0xff]  ;;  %888 = vmatprep.subr.mxu1 %v579_v63  ;;  %v563_v16 = vld [vmem:[#allocation6 + $0x68] sm:$0xff]  ;;  %v578_v22 = vld [vmem:[#allocation6 + $0xe0] sm:$0xff]  ;;  %s322_s19 = scalar_lea.vmem [#allocation8], %s875_s15 }
  0x46   : > { %491 = vmatprep.subr.mxu0 %v450_v15  ;;  %v391_v61 = vadd.f32 %v390_v50, %v389_v39  ;;  %v398_v62 = vadd.f32 %v397_v51, %v396_v40  ;;  %v351_v2 = vadd.f32 %v350_v53, %v349_v43  ;;  %v358_v3 = vadd.f32 %v357_v54, %v356_v44  ;;  %v438_v23 = vld [vmem:[#allocation3 + $0x28] sm:$0xff]  ;;  %v437_v28 = vld [vmem:[#allocation3 + $0x20] sm:$0xff]  ;;  %v436_v34 = vld [vmem:[#allocation3 + $0x18] sm:$0xff]  ;;  %s774_s21 = sshll.u32 %s322_s19, 4  ;;  %s761_s10 = scalar_lea.sflag [#allocation5], %s320_s9  ;;  %s775_s21 = int_to_ptr.vmem [resolvable:$true] %s774_s21 }
  0x47   : > { %492 = vmatpush1.msra.mxu0 %v449_v17  ;;  %v365_v4 = vadd.f32 %v364_v55, %v363_v45  ;;  %v372_v5 = vadd.f32 %v371_v56, %v370_v46  ;;  %v378_v7 = vrot.slane %v377_v59, 2  ;;  %v385_v8 = vrot.slane %v384_v60, 2  ;;  %v439_v17 = vld [vmem:[#allocation3 + $0x30] sm:$0xff]  ;;  %889 = vmatpush3.msra.mxu1 %v563_v16  ;;  %v562_v33 = vld [vmem:[#allocation6 + $0x60] sm:$0xff]  ;;  %v561_v40 = vld [vmem:[#allocation6 + $0x58] sm:$0xff]  ;;  %s1107_s12 = scalar_lea.vmem %s775_s21, 128 }
  0x48   : > { %493 = vmatprep.subr.mxu0 %v448_v21  ;;  %v392_v9 = vrot.slane %v391_v61, 2  ;;  %v399_v10 = vrot.slane %v398_v62, 2  ;;  %v352_v12 = vrot.slane %v351_v2, 1  ;;  %v359_v13 = vrot.slane %v358_v3, 1  ;;  %890 = vmatprep.subr.mxu1 %v578_v22  ;;  %v435_v37 = vld [vmem:[#allocation3 + $0x10] sm:$0xff]  ;;  %v434_v41 = vld [vmem:[#allocation3 + $0x8] sm:$0xff]  ;;  %p1108_p8 = scmp.ne.s32.totalorder %s775_s21, %s1107_s12 }
  0x49   : > { %494 = vmatpush1.msra.mxu0 %v447_v36  ;;  %v366_v14 = vrot.slane %v365_v4, 1  ;;  %v373_v15 = vrot.slane %v372_v5, 1  ;;  %v379_v18 = vadd.f32 %v378_v7, %v377_v59  ;;  %v386_v19 = vadd.f32 %v385_v8, %v384_v60  ;;  %v577_v36 = vld [vmem:[#allocation6 + $0xd8] sm:$0xff]  ;;  %891 = vmatpush3.msra.mxu1 %v562_v33  ;;  %v576_v44 = vld [vmem:[#allocation6 + $0xd0] sm:$0xff]  ;;  %v433_v45 = vld [vmem:[#allocation3] sm:$0xff]  ;;  %p1488_p10 = scmp.ne.s32.totalorder %s1483_s11, 0 }
  0x4a   : > { %495 = vmatprep.subr.mxu0 %v446_v42  ;;  %v393_v20 = vadd.f32 %v392_v9, %v391_v61  ;;  %v400_v21 = vadd.f32 %v399_v10, %v398_v62  ;;  %v353_v24 = vadd.f32 %v352_v12, %v351_v2  ;;  %v360_v25 = vadd.f32 %v359_v13, %v358_v3  ;;  %v560_v48 = vld [vmem:[#allocation6 + $0x50] sm:$0xff]  ;;  %v575_v50 = vld [vmem:[#allocation6 + $0xc8] sm:$0xff]  ;;  %v574_v54 = vld [vmem:[#allocation6 + $0xc0] sm:$0xff]  ;;  %s1201_s17 = smov [#allocation8]  }
  0x4b   : > { %496 = vmatpush1.msra.mxu0 %v445_v47  ;;  %v367_v26 = vadd.f32 %v366_v14, %v365_v4  ;;  %v374_v27 = vadd.f32 %v373_v15, %v372_v5  ;;  %v380_v29 = vrot.slane %v379_v18, 1  ;;  %v387_v30 = vrot.slane %v386_v19, 1  ;;  %892 = vmatprep.subr.mxu1 %v577_v36  ;;  %v558_v56 = vld [vmem:[#allocation6 + $0x40] sm:$0xff]  ;;  %v557_v59 = vld [vmem:[#allocation6 + $0x38] sm:$0xff]  ;;  %v572_v60 = vld [vmem:[#allocation6 + $0xb0] sm:$0xff]  ;;  %p1109_p11 = pnand %p1108_p8, %p1488_p10  ;;  %s1111_s20 = sshll.u32 %s1201_s17, 4  ;;  %s1112_s20 = int_to_ptr.vmem [resolvable:$false] %s1111_s20 }
  0x4c   : > { %497 = vmatprep.subr.mxu0 %v444_v52  ;;  %v394_v31 = vrot.slane %v393_v20, 1  ;;  %v401_v32 = vrot.slane %v400_v21, 1  ;;  %v412_v35 = vsel %vm411_vm1, %v360_v25, %v353_v24  ;;  %893 = vmatpush3.msra.mxu1 %v561_v40  ;;  %v559_v52 = vld [vmem:[#allocation6 + $0x48] sm:$0xff]  ;;  %v556_v61 = vld [vmem:[#allocation6 + $0x30] sm:$0xff]  ;;  %v554_v2 = vld [vmem:[#allocation6 + $0x20] sm:$0xff]  ;;  %v467_v22 = vlaneseq  ;;  %s1113_s27 = scalar_lea.vmem %s1112_s20, 256  ;;  %p1114_p0 = scmp.lt.s32.totalorder %s775_s21, %s1112_s20 }
  0x4d   : > { %498 = vmatpush1.msra.mxu0 %v443_v58  ;;  %v381_v38 = vadd.f32 %v380_v29, %v379_v18  ;;  %v388_v39 = vadd.f32 %v387_v30, %v386_v19  ;;  %v414_v43 = vsel %vm413_vm2, %v367_v26, %v412_v35  ;;  %894 = vmatprep.subr.mxu1 %v576_v44  ;;  %v573_v58 = vld [vmem:[#allocation6 + $0xb8] sm:$0xff]  ;;  %v571_v62 = vld [vmem:[#allocation6 + $0xa8] sm:$0xff]  ;;  %v568_v5 = vld [vmem:[#allocation6 + $0x90] sm:$0xff]  ;;  %p1110_p13 = pneg %p1109_p11  ;;  %p1115_p6 = scmp.lt.s32.totalorder %s1113_s27, %s1107_s12 }
  0x4e   : > { %499 = vmatprep.subr.mxu0 %v442_v1  ;;  %v395_v42 = vadd.f32 %v394_v31, %v393_v20  ;;  %v402_v46 = vadd.f32 %v401_v32, %v400_v21  ;;  %v416_v47 = vsel %vm415_vm3, %v374_v27, %v414_v43  ;;  %895 = vmatpush3.msra.mxu1 %v560_v48  ;;  %v555_v63 = vld [vmem:[#allocation6 + $0x28] sm:$0xff]  ;;  %v570_v1 = vld [vmem:[#allocation6 + $0xa0] sm:$0xff]  ;;  %v569_v3 = vld [vmem:[#allocation6 + $0x98] sm:$0xff] }
  0x4f   : > { %500 = vmatpush1.msra.mxu0 %v441_v6  ;;  %v418_v49 = vsel %vm417_vm4, %v381_v38, %v416_v47  ;;  %896 = vmatprep.subr.mxu1 %v575_v50  ;;  %v553_v4 = vld [vmem:[#allocation6 + $0x18] sm:$0xff]  ;;  %v552_v6 = vld [vmem:[#allocation6 + $0x10] sm:$0xff]  ;;  %v567_v7 = vld [vmem:[#allocation6 + $0x88] sm:$0xff]  ;;  %p1116_p7 = por %p1115_p6, %p1114_p0 }
  0x50   : > { %501 = vmatprep.subr.mxu0 %v440_v11  ;;  %v420_v51 = vsel %vm419_vm5, %v388_v39, %v418_v49  ;;  %897 = vmatpush3.msra.mxu1 %v559_v52  ;;  %v551_v8 = vld [vmem:[#allocation6 + $0x8] sm:$0xff]  ;;  %v566_v9 = vld [vmem:[#allocation6 + $0x80] sm:$0xff]  ;;  %v675_v11 = vld [vmem:[%s1477_s5 + $0x78] sm:$0xff] }
  0x51   : > { %502 = vmatpush1.msra.mxu0 %v439_v17  ;;  %v422_v53 = vsel %vm421_vm6, %v395_v42, %v420_v51  ;;  %898 = vmatprep.subr.mxu1 %v574_v54  ;;  %v550_v10 = vld [vmem:[#allocation6] sm:$0xff]  ;;  %v674_v12 = vld [vmem:[%s1477_s5 + $0x70] sm:$0xff]  ;;  %v673_v13 = vld [vmem:[%s1477_s5 + $0x68] sm:$0xff]  ;;  %p1117_p9 = pnand %p1116_p7, %p1110_p13 }
  0x52   : > { %503 = vmatprep.subr.mxu0 %v438_v23  ;;  %v424_v55 = vsel %vm423_vm7, %v402_v46, %v422_v53  ;;  %899 = vmatpush3.msra.mxu1 %v558_v56  ;;  %v672_v14 = vld [vmem:[%s1477_s5 + $0x60] sm:$0xff]  ;;  %v671_v15 = vld [vmem:[%s1477_s5 + $0x58] sm:$0xff]  ;;  %v670_v16 = vld [vmem:[%s1477_s5 + $0x50] sm:$0xff]  ;;  %v468_v23 = vshrl.u32 %v467_v22, 7 }
  0x53   : > { %504 = vmatpush1.msra.mxu0 %v437_v28  ;;  %v432_v57 = vmul.f32 0.05, %v424_v55  ;;  %900 = vmatprep.subr.mxu1 %v573_v58  ;;  %v669_v17 = vld [vmem:[%s1477_s5 + $0x48] sm:$0xff]  ;;  %v668_v18 = vld [vmem:[%s1477_s5 + $0x40] sm:$0xff]  ;;  %v667_v19 = vld [vmem:[%s1477_s5 + $0x38] sm:$0xff] }
  0x54   : > { %505 = vmatprep.subr.mxu0 %v436_v34  ;;  %901 = vmatpush3.msra.mxu1 %v557_v59  ;;  %v666_v20 = vld [vmem:[%s1477_s5 + $0x30] sm:$0xff]  ;;  %v665_v21 = vld [vmem:[%s1477_s5 + $0x28] sm:$0xff]  ;;  %v469_v24 = vsub.s32 0, %v468_v23  ;;  %v465_v25 = vld [vmem:[%s1474_s2] sm:$0x3]  ;;  %v473_v26 = vsub.s32 1, %v468_v23 }
  0x55   : > { %506 = vmatpush1.msra.mxu0 %v435_v37  ;;  %902 = vmatprep.subr.mxu1 %v572_v60  ;;  %v664_v35 = vld [vmem:[%s1477_s5 + $0x20] sm:$0xff]  ;;  %v663_v36 = vld [vmem:[%s1477_s5 + $0x18] sm:$0xff]  ;;  %v662_v37 = vld [vmem:[%s1477_s5 + $0x10] sm:$0xff] }
  0x56   : > { %507 = vmatprep.subr.mxu0 %v434_v41  ;;  %903 = vmatpush3.msra.mxu1 %v556_v61  ;;  %v470_v27 = vrot.slane %v465_v25, %v469_v24  ;;  %v474_v28 = vrot.slane %v465_v25, %v473_v26  ;;  %v661_v38 = vld [vmem:[%s1477_s5 + $0x8] sm:$0xff]  ;;  %v660_v39 = vld [vmem:[%s1477_s5] sm:$0xff] }
  0x57   : > { %508 = vmatpush1.msra.mxu0 %v433_v45  ;;  %904 = vmatprep.subr.mxu1 %v571_v62  ;;  %v878_v41 = vld [vmem:[%s1476_s4] ss:$0 sm:$0xff] }
  0x58   : > { %936 = vmatprep.subr.mxu0 %v1199_v0  ;;  %542 = vmatmul.mubr.f32.vlgmr.msra.gmra.mxu0 %v432_v57  ;;  %v879_v46 = vld [vmem:[%s1478_s6] ss:$0 sm:$0xff] }
  0x59   : > { %905 = vmatpush3.msra.mxu1 %v555_v63  ;;  %937 = vmatpush3.msra.mxu0 %v675_v11 }
  0x5a   : > { %906 = vmatprep.subr.mxu1 %v570_v1  ;;  %938 = vmatprep.subr.mxu0 %v1199_v0 }
  0x5b   : > { %907 = vmatpush3.msra.mxu1 %v554_v2  ;;  %939 = vmatpush3.msra.mxu0 %v674_v12 }
  0x5c   : > { %908 = vmatprep.subr.mxu1 %v569_v3  ;;  %940 = vmatprep.subr.mxu0 %v1199_v0 }
  0x5d   : > { %909 = vmatpush3.msra.mxu1 %v553_v4  ;;  %941 = vmatpush3.msra.mxu0 %v673_v13 }
  0x5e   : > { %910 = vmatprep.subr.mxu1 %v568_v5  ;;  %942 = vmatprep.subr.mxu0 %v1199_v0 }
  0x5f   : > { %911 = vmatpush3.msra.mxu1 %v552_v6  ;;  %943 = vmatpush3.msra.mxu0 %v672_v14 }
  0x60   : > { %912 = vmatprep.subr.mxu1 %v567_v7  ;;  %944 = vmatprep.subr.mxu0 %v1199_v0 }
  0x61   : > { %913 = vmatpush3.msra.mxu1 %v551_v8  ;;  %945 = vmatpush3.msra.mxu0 %v671_v15 }
  0x62   : > { %914 = vmatprep.subr.mxu1 %v566_v9  ;;  %946 = vmatprep.subr.mxu0 %v1199_v0 }
  0x63   : > { %915 = vmatpush3.msra.mxu1 %v550_v10  ;;  %947 = vmatpush3.msra.mxu0 %v670_v16 }
  0x64   : > { %948 = vmatprep.subr.mxu0 %v1199_v0  ;;  %968 = vmatprep.mubr.msk.f32.mxu0 %vm1200_vm8, %v1199_v0 }
  0x65   : > { %949 = vmatpush3.msra.mxu0 %v669_v17 }
  0x66   : > { %950 = vmatprep.subr.mxu0 %v1199_v0 }
  0x67   : > { %951 = vmatpush3.msra.mxu0 %v668_v18 }
  0x68   : > { %952 = vmatprep.subr.mxu0 %v1199_v0 }
  0x69   : > { %953 = vmatpush3.msra.mxu0 %v667_v19 }
  0x6a   : > { %954 = vmatprep.subr.mxu0 %v1199_v0 }
  0x6b   : > { %955 = vmatpush3.msra.mxu0 %v666_v20 }
  0x6c   : > { %956 = vmatprep.subr.mxu0 %v1199_v0 }
  0x6d   : > { %957 = vmatpush3.msra.mxu0 %v665_v21 }
  0x6e   : > { %958 = vmatprep.subr.mxu0 %v1199_v0 }
  0x6f   : > { %959 = vmatpush3.msra.mxu0 %v664_v35 }
  0x70   : > { %960 = vmatprep.subr.mxu0 %v1199_v0 }
  0x71   : > { %961 = vmatpush3.msra.mxu0 %v663_v36 }
  0x72   : > { %962 = vmatprep.subr.mxu0 %v1199_v0 }
  0x73   : > { %963 = vmatpush3.msra.mxu0 %v662_v37 }
  0x74   : > { %964 = vmatprep.subr.mxu0 %v1199_v0 }
  0x75   : > { %965 = vmatpush3.msra.mxu0 %v661_v38 }
  0x76   : > { %966 = vmatprep.subr.mxu0 %v1199_v0 }
  0x77   : > { %967 = vmatpush3.msra.mxu0 %v660_v39 }
 0x118   : > { %v543_v29 = vpop.f32.mrf.mxu0 }
 0x119   : > { %v544_v30 = vadd.f32 %v543_v29, %v470_v27 }
 0x11a   : > { %v545_v31 = vpop.f32.mrf.mxu0 }
 0x11b   : > { %v546_v32 = vadd.f32 %v545_v31, %v474_v28  ;;  %v548_v34 = vmax.f32 %v544_v30, 0.0 }
 0x11d   : > { %v549_v33 = vmax.f32 %v546_v32, 0.0 }
 0x11f   : > { %653 = vmatprep.mubr.f32.mxu1 %v549_v33 }
 0x120   : > { %654 = vmatmul.mubr.f32.vlgmr.msra.gmra.mxu1 %v548_v34 }
 0x1e0   : > { %v916_v40 = vpop.f32.mrf.mxu1 }
 0x1e2   : > { %v917_v42 = vpop.f32.mrf.mxu1 }
 0x1e3   : > { %v918_v43 = vadd.f32 %v917_v42, %v916_v40 }
 0x1e5   : > { %v656_v44 = vadd.f32 %v918_v43, %v878_v41 }
 0x1e7   : > { %v659_v45 = vmax.f32 %v656_v44, 0.0 }
 0x1e9   : > { %969 = vmatmul.mubr.f32.vlgmr.msra.gmra.mxu0 %v659_v45 }
 0x2a9   : > { %v749_v47 = vpop.f32.mrf.mxu0 }
 0x2aa   : > { %v750_v48 = vadd.f32 %v879_v46, %v749_v47 }
 0x2ab   : > { %v970_v49 = vpop.f32.mrf.mxu0 }
 0x2ac   : > { %v753_v0 = vmul.f32 %v750_v48, %v750_v48 }
 0x2ae   : > { %754 = vadd.xlane.f32.xlu0 %v753_v0 }
 0x337   : > { %v755_v50 = vpop.xlane.xlu0 %754 }
 0x338   : > { %v756_v51 = vmax.f32 %v755_v50, 1e-24 }
 0x33a   : > { %1053 = vrsqrt.f32 %v756_v51 }
 0x347   : > { %v1054_v52 = vpop.eup %1053 }
 0x348   : > { %v758_v53 = vmul.f32 %v1054_v52, %v750_v48 }
 0x34a   : > { %759 = vst [vmem:[%s322_s19] sm:$0xff] %v758_v53 }
 0x34b   : > { %1120 = shalt.err (!%p1117_p9)
}
 0x34c   : > { %s1121_s22 = scalar_lea.hbm %s772_s8, 128  ;;  %s1125_s15 = scalar_lea.hbm %s1479_s7, 256 }
 0x34d   : > { %p1122_p12 = scmp.ne.s32.totalorder %s772_s8, %s1121_s22  ;;  %p1126_p5 = scmp.lt.s32.totalorder %s772_s8, %s1479_s7 }
 0x34e   : > { %p1127_p3 = scmp.lt.s32.totalorder %s1125_s15, %s1121_s22 }
 0x34f   : > { %p1123_p1 = pnand %p1122_p12, %p1488_p10 }
 0x350   : > { %p1128_p4 = por %p1127_p3, %p1126_p5 }
 0x351   : > { %p1124_p2 = pneg %p1123_p1 }
 0x353   : > { %p1129_p8 = pnand %p1128_p4, %p1124_p2 }
 0x355   : > { %1132 = shalt.err (!%p1129_p8)
}
 0x356   : > { %979 = dma.vmem_to_hbm [thread:$0]  (%p1488_p10), %s775_s21, 128, %s772_s8, %s761_s10  }
 0x357 PF: > { %p996_p11 = scmp.ge.s32.totalorder %s1191_s29, 2  ;;  %s786_s23 = sand.u32 1, %s1171_s24  }
 0x358   : > { %p1489_p13 = scmp.ne.s32.totalorder %s1484_s13, 0  ;;  %s787_s30 = scalar_lea.sflag [#allocation5], %s786_s23 }
 0x35a   : > { %p989_p0 = pnand %p996_p11, %p1489_p13 }
 0x35c   : > { %p990_p6 = pneg %p989_p0 }
 0x35e   : > { %1166 = dma.done.wait (%p990_p6), %s787_s30, 128  }
 0x35f   : > { %1168 = vsyncadd (%p990_p6), %s787_s30, 4294967168  ;;  %s22_s29 = sadd.s32 1, %s1191_s29   ;;  %s1490_s11 = sld [smem:[#allocation12_spill]] }
 0x360   : > { %p19_p7 = scmp.ge.s32.totalorder %s22_s29, 4   ;;  %s1491_s24 = smov %s1175_s25 }
 0x361   : > { %s1492_s25 = smov %s1179_s26  ;;  %s1493_s26 = smov %s1295_s14 }
 0x362   : > { %s1494_s27 = smov %s1187_s28  ;;  %21 = sbr.rel (!%p19_p7) target bundleno = 6 (0x6), region = 100 }
 0x365   : > { %s1495_s28 = smov %s1490_s11 }
 0x367   :  { %792 = vsyncpa [#allocation4], 1 }
 0x368   :  { %794 = vsyncpa [#allocation4 + $0x1], 1 }
 0x369   :  { %795 = vsyncpa [#allocation7], 1 }
 0x36a   :  { %796 = vsyncpa [#allocation5], 1 }
 0x36b   :  { %798 = vsyncpa [#allocation5 + $0x1], 1 }

</bundles_post_ra>
